<compile_context>
chip_gen: v6e
topology: v6e:2x2x1
jax: 0.10.0
libtpu: 0.0.40
codegen_flags: <defaults>
</compile_context>

<pallas_src>
import functools

import jax
import jax.numpy as jnp
from jax.experimental import pallas as pl
from jax.experimental.pallas import tpu as pltpu

EPS = 1e-5


# --------------------------------------------------------------------------------------
# Kernel
# --------------------------------------------------------------------------------------
def _sepconv_kernel(x_ref, band1_ref, shift1_ref, band2_ref, shift2_ref,
                    o_ref, y1p_ref, *, stride, pad):
    """Fully fused SepConv forward for `nb` samples, lane-dense (rows, W*C) layout.

    x_ref:      stride==1: (nb, H+2p, W*C_in)  H-padded input
                stride> 1: (K, nb, Ho1, W*C_in) K pre-phased row slabs
    band1_ref:  (K, W*C_in,   Wo1*C_in)  per-kh banded [depthwise*1x1*BN1scale], mxu dtype
    shift1_ref: (1, Wo1*C_in)            folded BN1 shift (f32)
    band2_ref:  (K, Wo1*C_in, Wo2*C_out) per-kh banded [depthwise*1x1*BN2scale], mxu dtype
    shift2_ref: (1, Wo2*C_out)           folded BN2 shift (f32)
    o_ref:      (nb, Ho2, Wo2*C_out)
    y1p_ref:    VMEM scratch (nb, Ho1+2p, Wo1*C_in), f32 -- H-padded stage-1 output.
    """
    f32 = jnp.float32
    K = band1_ref.shape[0]
    mxu_dtype = band1_ref.dtype
    nb, Ho2, Wo2C = o_ref.shape
    Wo1C = y1p_ref.shape[2]
    Ho1 = y1p_ref.shape[1] - 2 * pad
    M1 = nb * Ho1
    M2 = nb * Ho2

    # ---------- stage 1: ReLU -> depthwise KxK (stride) . 1x1 . BN1-scale ----------
    # ReLU once, then K banded matmuls (one per kh row offset) on the MXU.
    x = jnp.maximum(x_ref[...].astype(f32), 0.0)
    acc1 = jnp.zeros((M1, Wo1C), f32)
    for kh in range(K):
        if stride == 1:
            slab = x[:, kh:kh + Ho1, :]          # (nb, Ho1, W*C_in)
        else:
            slab = x[kh]                         # pre-phased rows: (nb, Ho1, W*C_in)
        slab = slab.reshape(M1, -1).astype(mxu_dtype)
        acc1 = acc1 + jnp.dot(slab, band1_ref[kh], preferred_element_type=f32)
    y1 = jnp.maximum(acc1 + shift1_ref[...], 0.0)    # BN1 shift + ReLU (scale is in band1)

    # Stage-1 result stays in VMEM.  Only the H halo needs zeros (W halo is absorbed
    # into the band), and only the 2*pad halo rows are written -- never the interior,
    # and never gated on program_id (safe under megacore "parallel" sharding).
    if pad > 0:
        halo = jnp.zeros((nb, pad, Wo1C), f32)
        y1p_ref[:, 0:pad, :] = halo
        y1p_ref[:, pad + Ho1:2 * pad + Ho1, :] = halo
    y1p_ref[:, pad:pad + Ho1, :] = y1.reshape(nb, Ho1, Wo1C)

    # ---------- stage 2: depthwise KxK (stride 1) . 1x1 . BN2-scale ----------
    acc2 = jnp.zeros((M2, Wo2C), f32)
    for kh in range(K):
        slab = y1p_ref[:, kh:kh + Ho2, :].reshape(M2, Wo1C).astype(mxu_dtype)
        acc2 = acc2 + jnp.dot(slab, band2_ref[kh], preferred_element_type=f32)
    y2 = acc2 + shift2_ref[...]                      # BN2 shift (scale is in band2)
    o_ref[...] = y2.reshape(nb, Ho2, Wo2C).astype(o_ref.dtype)


# --------------------------------------------------------------------------------------
# Parameter preprocessing (hoist out of the per-call path; run once per params/shape)
# --------------------------------------------------------------------------------------
def _fold_bn(gamma, beta, mean, var):
    scale = gamma / jnp.sqrt(var + EPS)
    shift = beta - mean * scale
    return scale.astype(jnp.float32), shift.astype(jnp.float32)


def _banded_matrix(dw_kh, pw_mat, bn_scale, w_in, w_out, stride, pad, dtype):
    """(w_in*C_in, w_out*C_o) matrix fusing the kh-row depthwise taps, the 1x1 conv
    and the folded BN scale.  Output column (wo, c') reads input column
    wi = wo*stride + kw - pad (W padding handled by band clipping)."""
    K = dw_kh.shape[0]
    wi = jnp.arange(w_in)[:, None]
    wo = jnp.arange(w_out)[None, :]
    m = jnp.zeros((w_in * pw_mat.shape[0], w_out * pw_mat.shape[1]), jnp.float32)
    for kw in range(K):
        blk = dw_kh[kw][:, None] * pw_mat * bn_scale[None, :]           # (C_in, C_o)
        sel = (wi == wo * stride + kw - pad).astype(jnp.float32)        # (w_in, w_out)
        m = m + jnp.kron(sel, blk)
    return m.astype(dtype)


def sepconv_prepare(params, *, kernel_size, stride, padding, H, W,
                    mxu_dtype=jnp.bfloat16):
    """Build all kernel operands once (band matrices, BN shifts). Cache per shape."""
    K, s, p = kernel_size, stride, padding
    C_in = params["dw1"].shape[0]
    C_out = params["pw2"].shape[0]
    Ho1 = (H + 2 * p - K) // s + 1
    Wo1 = (W + 2 * p - K) // s + 1
    Ho2 = Ho1 + 2 * p - K + 1
    Wo2 = Wo1 + 2 * p - K + 1

    dw1 = jnp.transpose(params["dw1"][:, 0], (1, 2, 0))          # (K, K, C_in)  [kh,kw,c]
    dw2 = jnp.transpose(params["dw2"][:, 0], (1, 2, 0))
    pw1 = params["pw1"][:, :, 0, 0].T                            # (C_in, C_in)
    pw2 = params["pw2"][:, :, 0, 0].T                            # (C_in, C_out)
    sc1, sh1 = _fold_bn(params["g1"], params["b1"], params["m1"], params["v1"])
    sc2, sh2 = _fold_bn(params["g2"], params["b2"], params["m2"], params["v2"])

    band1 = jnp.stack([_banded_matrix(dw1[kh], pw1, sc1, W, Wo1, s, p, mxu_dtype)
                       for kh in range(K)])                      # (K, W*C_in,   Wo1*C_in)
    band2 = jnp.stack([_banded_matrix(dw2[kh], pw2, sc2, Wo1, Wo2, 1, p, mxu_dtype)
                       for kh in range(K)])                      # (K, Wo1*C_in, Wo2*C_out)
    shift1 = jnp.tile(sh1, Wo1).reshape(1, Wo1 * C_in)
    shift2 = jnp.tile(sh2, Wo2).reshape(1, Wo2 * C_out)

    dims = dict(K=K, stride=s, pad=p, H=H, W=W, C_in=C_in, C_out=C_out,
                Ho1=Ho1, Wo1=Wo1, Ho2=Ho2, Wo2=Wo2)
    return dict(band1=band1, shift1=shift1, band2=band2, shift2=shift2, dims=dims)


# --------------------------------------------------------------------------------------
# Wrapper
# --------------------------------------------------------------------------------------
def sepconv_apply(x_nchw, prepared, *, samples_per_step=None):
    """SepConv forward. x_nchw: (N, C_in, H, W). Returns (N, C_out, Ho2, Wo2)."""
    d = prepared["dims"]
    K, s, p = d["K"], d["stride"], d["pad"]
    C_in, C_out = d["C_in"], d["C_out"]
    H, W = d["H"], d["W"]
    Ho1, Wo1, Ho2, Wo2 = d["Ho1"], d["Wo1"], d["Ho2"], d["Wo2"]

    N = x_nchw.shape[0]
    nb = N if samples_per_step is None else samples_per_step     # samples per grid step
    assert N % nb == 0, (N, nb)
    steps = N // nb

    x = jnp.transpose(x_nchw, (0, 2, 3, 1))                      # NHWC
    xp = jnp.pad(x, ((0, 0), (p, p), (0, 0), (0, 0)))            # pad H only (W pad in band)
    Hp = H + 2 * p

    if s == 1:
        x_in = xp.reshape(N, Hp, W * C_in)                       # free, lane-dense
        x_spec = pl.BlockSpec((nb, Hp, W * C_in), lambda i: (i, 0, 0))
    else:
        # Only K row-phases are pre-extracted (Kx DMA, not K^2x); the strided W taps
        # are encoded in the banded matrices.
        rows = [xp[:, kh:kh + (Ho1 - 1) * s + 1:s] for kh in range(K)]
        x_in = jnp.stack(rows, axis=0).reshape(K, N, Ho1, W * C_in)
        x_spec = pl.BlockSpec((K, nb, Ho1, W * C_in), lambda i: (0, i, 0, 0))

    kernel = functools.partial(_sepconv_kernel, stride=s, pad=p)

    out_flat = pl.pallas_call(
        kernel,
        out_shape=jax.ShapeDtypeStruct((N, Ho2, Wo2 * C_out), jnp.float32),
        grid=(steps,),
        in_specs=[
            x_spec,
            pl.BlockSpec((K, W * C_in, Wo1 * C_in), lambda i: (0, 0, 0)),
            pl.BlockSpec((1, Wo1 * C_in), lambda i: (0, 0)),
            pl.BlockSpec((K, Wo1 * C_in, Wo2 * C_out), lambda i: (0, 0, 0)),
            pl.BlockSpec((1, Wo2 * C_out), lambda i: (0, 0)),
        ],
        out_specs=pl.BlockSpec((nb, Ho2, Wo2 * C_out), lambda i: (i, 0, 0)),
        scratch_shapes=[pltpu.VMEM((nb, Ho1 + 2 * p, Wo1 * C_in), jnp.float32)],
        compiler_params=pltpu.CompilerParams(
            dimension_semantics=("parallel",),
            vmem_limit_bytes=32 * 1024 * 1024),
    )(x_in, prepared["band1"], prepared["shift1"], prepared["band2"], prepared["shift2"])

    out = out_flat.reshape(N, Ho2, Wo2, C_out)                   # free reshape
    return jnp.transpose(out, (0, 3, 1, 2))                      # NCHW


def sepconv_pallas(x_nchw, params, *, kernel_size, stride, padding,
                   mxu_dtype=jnp.bfloat16, samples_per_step=None):
    """Convenience: prepare + apply.  For repeated calls, hoist sepconv_prepare."""
    _, _, H, W = x_nchw.shape
    prepared = sepconv_prepare(params, kernel_size=kernel_size, stride=stride,
                               padding=padding, H=H, W=W, mxu_dtype=mxu_dtype)
    return sepconv_apply(x_nchw, prepared, samples_per_step=samples_per_step)


# -------------------- pure-JAX reference (for correctness check) --------------------
def sepconv_ref(x_nchw, params, *, kernel_size, stride, padding):
    def conv(x, w, s, p, groups):
        return jax.lax.conv_general_dilated(
            x, w, window_strides=(s, s), padding=[(p, p), (p, p)],
            dimension_numbers=("NCHW", "OIHW", "NCHW"),
            feature_group_count=groups)

    def bn(x, g, b, m, v):
        return (x - m[None, :, None, None]) / jnp.sqrt(v[None, :, None, None] + EPS) \
            * g[None, :, None, None] + b[None, :, None, None]

    C_in = x_nchw.shape[1]
    y = jnp.maximum(x_nchw, 0.0)
    y = conv(y, params["dw1"], stride, padding, C_in)
    y = conv(y, params["pw1"], 1, 0, 1)
    y = bn(y, params["g1"], params["b1"], params["m1"], params["v1"])
    y = jnp.maximum(y, 0.0)
    y = conv(y, params["dw2"], 1, padding, C_in)
    y = conv(y, params["pw2"], 1, 0, 1)
    y = bn(y, params["g2"], params["b2"], params["m2"], params["v2"])
    return y


def init_params(key, C_in, C_out, K):
    ks = jax.random.split(key, 10)
    return {
        "dw1": 0.1 * jax.random.normal(ks[0], (C_in, 1, K, K), jnp.float32),
        "pw1": 0.1 * jax.random.normal(ks[1], (C_in, C_in, 1, 1), jnp.float32),
        "g1": 1.0 + 0.1 * jax.random.normal(ks[2], (C_in,), jnp.float32),
        "b1": 0.1 * jax.random.normal(ks[3], (C_in,), jnp.float32),
        "m1": 0.1 * jax.random.normal(ks[4], (C_in,), jnp.float32),
        "v1": 0.5 + jnp.abs(jax.random.normal(ks[5], (C_in,), jnp.float32)),
        "dw2": 0.1 * jax.random.normal(ks[6], (C_in, 1, K, K), jnp.float32),
        "pw2": 0.1 * jax.random.normal(ks[7], (C_out, C_in, 1, 1), jnp.float32),
        "g2": 1.0 + 0.1 * jax.random.normal(ks[8], (C_out,), jnp.float32),
        "b2": 0.1 * jax.random.normal(ks[9], (C_out,), jnp.float32),
        "m2": 0.05 * jnp.arange(C_out, dtype=jnp.float32),
        "v2": 0.5 + 0.1 * jnp.arange(C_out, dtype=jnp.float32),
    }


if __name__ == "__main__":
    # Small shapes consistent with the module: batch=2, C_in=4, C_out=8, 16x16.
    N, C_in, C_out, H, W = 2, 4, 16, 16, 16
    N, C_in, C_out, H, W = 2, 4, 8, 16, 16
    K, padding = 3, 1

    key = jax.random.PRNGKey(0)
    kx, kp = jax.random.split(key)
    x = jax.random.normal(kx, (N, C_in, H, W), jnp.float32)
    params = init_params(kp, C_in, C_out, K)

    for stride in (1, 2):          # normal cell and reduction cell
        ref = jax.block_until_ready(
            sepconv_ref(x, params, kernel_size=K, stride=stride, padding=padding))

        # Default bf16-MXU path: prepare once (hoisted), jit the apply.
        prepared = sepconv_prepare(params, kernel_size=K, stride=stride,
                                   padding=padding, H=H, W=W,
                                   mxu_dtype=jnp.bfloat16)
        apply_fn = jax.jit(functools.partial(sepconv_apply, prepared=prepared))
        out_bf16 = jax.block_until_ready(apply_fn(x))
        assert out_bf16.shape == ref.shape, (out_bf16.shape, ref.shape)
        assert jnp.allclose(out_bf16, ref, atol=5e-3, rtol=5e-3), \
            ("bf16", stride, float(jnp.max(jnp.abs(out_bf16 - ref))))

        # f32-MXU path: tight numerical check of the fused banded formulation.
        out_f32 = jax.block_until_ready(
            sepconv_pallas(x, params, kernel_size=K, stride=stride,
                           padding=padding, mxu_dtype=jnp.float32))
        assert jnp.allclose(out_f32, ref, atol=2e-4, rtol=2e-4), \
            ("f32", stride, float(jnp.max(jnp.abs(out_f32 - ref))))

    print("KERNEL_OK")
</pallas_src>

<mosaic_0001>
module attributes {stable_mosaic.version = 11 : i64} {
  func.func @_sepconv_kernel(%arg0: i32, %arg1: memref<2x18x64xf32, #tpu.memory_space<vmem>>, %arg2: memref<3x64x64xbf16, #tpu.memory_space<vmem>>, %arg3: memref<1x64xf32, #tpu.memory_space<vmem>>, %arg4: memref<3x64x128xbf16, #tpu.memory_space<vmem>>, %arg5: memref<1x128xf32, #tpu.memory_space<vmem>>, %arg6: memref<2x16x128xf32, #tpu.memory_space<vmem>>, %arg7: memref<2x18x64xf32, #tpu.memory_space<vmem>>) attributes {dimension_semantics = [#tpu.dimension_semantics<parallel>], iteration_bounds = array<i64: 1>, scalar_prefetch = 0 : i64, scratch_operands = 1 : i64, tpu.core_type = #tpu.core_type<tc>, window_params = [{transform_indices = @transform_0, window_bounds = array<i64: 2, 18, 64>}, {pipeline_mode = #tpu.pipeline_mode<synchronous>, transform_indices = @transform_1, window_bounds = array<i64: 3, 64, 64>}, {pipeline_mode = #tpu.pipeline_mode<synchronous>, transform_indices = @transform_2, window_bounds = array<i64: 1, 64>}, {pipeline_mode = #tpu.pipeline_mode<synchronous>, transform_indices = @transform_3, window_bounds = array<i64: 3, 64, 128>}, {pipeline_mode = #tpu.pipeline_mode<synchronous>, transform_indices = @transform_4, window_bounds = array<i64: 1, 128>}, {transform_indices = @transform_5, window_bounds = array<i64: 2, 16, 128>}]} {
    %c0 = arith.constant 0 : index
    %c0_0 = arith.constant 0 : index
    %c0_1 = arith.constant 0 : index
    %0 = vector.load %arg1[%c0, %c0_0, %c0_1] : memref<2x18x64xf32, #tpu.memory_space<vmem>>, vector<2x18x64xf32>
    %cst = arith.constant 0.000000e+00 : f32
    %1 = vector.broadcast %cst : f32 to vector<2x18x64xf32>
    %2 = arith.maximumf %0, %1 : vector<2x18x64xf32>
    %cst_2 = arith.constant 0.000000e+00 : f32
    %3 = vector.broadcast %cst_2 : f32 to vector<32x64xf32>
    %4 = vector.extract_strided_slice %2 {offsets = [0, 0, 0], sizes = [2, 16, 64], strides = [1, 1, 1]} : vector<2x18x64xf32> to vector<2x16x64xf32>
    %5 = vector.shape_cast %4 : vector<2x16x64xf32> to vector<32x64xf32>
    %6 = arith.truncf %5 : vector<32x64xf32> to vector<32x64xbf16>
    %c0_3 = arith.constant 0 : index
    %c0_4 = arith.constant 0 : index
    %c0_5 = arith.constant 0 : index
    %7 = vector.load %arg2[%c0_3, %c0_4, %c0_5] : memref<3x64x64xbf16, #tpu.memory_space<vmem>>, vector<1x64x64xbf16>
    %8 = vector.shape_cast %7 : vector<1x64x64xbf16> to vector<64x64xbf16>
    %cst_6 = arith.constant dense<0.000000e+00> : vector<32x64xf32>
    %9 = tpu.matmul %6, %8, %cst_6 {dimension_numbers = #tpu.dot_dimension_numbers<[1], [0], [0], [1], [0, 0, 1, 1], [], []>} : vector<32x64xbf16>, vector<64x64xbf16>, vector<32x64xf32> -> vector<32x64xf32>
    %10 = arith.addf %3, %9 : vector<32x64xf32>
    %11 = vector.extract_strided_slice %2 {offsets = [0, 1, 0], sizes = [2, 16, 64], strides = [1, 1, 1]} : vector<2x18x64xf32> to vector<2x16x64xf32>
    %12 = vector.shape_cast %11 : vector<2x16x64xf32> to vector<32x64xf32>
    %13 = arith.truncf %12 : vector<32x64xf32> to vector<32x64xbf16>
    %c1 = arith.constant 1 : index
    %c0_7 = arith.constant 0 : index
    %c0_8 = arith.constant 0 : index
    %14 = vector.load %arg2[%c1, %c0_7, %c0_8] : memref<3x64x64xbf16, #tpu.memory_space<vmem>>, vector<1x64x64xbf16>
    %15 = vector.shape_cast %14 : vector<1x64x64xbf16> to vector<64x64xbf16>
    %cst_9 = arith.constant dense<0.000000e+00> : vector<32x64xf32>
    %16 = tpu.matmul %13, %15, %cst_9 {dimension_numbers = #tpu.dot_dimension_numbers<[1], [0], [0], [1], [0, 0, 1, 1], [], []>} : vector<32x64xbf16>, vector<64x64xbf16>, vector<32x64xf32> -> vector<32x64xf32>
    %17 = arith.addf %10, %16 : vector<32x64xf32>
    %18 = vector.extract_strided_slice %2 {offsets = [0, 2, 0], sizes = [2, 16, 64], strides = [1, 1, 1]} : vector<2x18x64xf32> to vector<2x16x64xf32>
    %19 = vector.shape_cast %18 : vector<2x16x64xf32> to vector<32x64xf32>
    %20 = arith.truncf %19 : vector<32x64xf32> to vector<32x64xbf16>
    %c2 = arith.constant 2 : index
    %c0_10 = arith.constant 0 : index
    %c0_11 = arith.constant 0 : index
    %21 = vector.load %arg2[%c2, %c0_10, %c0_11] : memref<3x64x64xbf16, #tpu.memory_space<vmem>>, vector<1x64x64xbf16>
    %22 = vector.shape_cast %21 : vector<1x64x64xbf16> to vector<64x64xbf16>
    %cst_12 = arith.constant dense<0.000000e+00> : vector<32x64xf32>
    %23 = tpu.matmul %20, %22, %cst_12 {dimension_numbers = #tpu.dot_dimension_numbers<[1], [0], [0], [1], [0, 0, 1, 1], [], []>} : vector<32x64xbf16>, vector<64x64xbf16>, vector<32x64xf32> -> vector<32x64xf32>
    %24 = arith.addf %17, %23 : vector<32x64xf32>
    %c0_13 = arith.constant 0 : index
    %c0_14 = arith.constant 0 : index
    %25 = vector.load %arg3[%c0_13, %c0_14] : memref<1x64xf32, #tpu.memory_space<vmem>>, vector<1x64xf32>
    %26 = vector.broadcast %25 : vector<1x64xf32> to vector<32x64xf32>
    %27 = arith.addf %24, %26 : vector<32x64xf32>
    %cst_15 = arith.constant 0.000000e+00 : f32
    %28 = vector.broadcast %cst_15 : f32 to vector<32x64xf32>
    %29 = arith.maximumf %27, %28 : vector<32x64xf32>
    %cst_16 = arith.constant 0.000000e+00 : f32
    %30 = vector.broadcast %cst_16 : f32 to vector<2x1x64xf32>
    %c0_17 = arith.constant 0 : index
    %c0_18 = arith.constant 0 : index
    %c0_19 = arith.constant 0 : index
    %31 = vector.load %arg7[%c0_17, %c0_18, %c0_19] : memref<2x18x64xf32, #tpu.memory_space<vmem>>, vector<2x1x64xf32>
    tpu.vector_store %arg7[%c0_17, %c0_18, %c0_19], %30 {strides = array<i32>} : memref<2x18x64xf32, #tpu.memory_space<vmem>>, vector<2x1x64xf32>,
    %c0_20 = arith.constant 0 : index
    %c17 = arith.constant 17 : index
    %c0_21 = arith.constant 0 : index
    %32 = vector.load %arg7[%c0_20, %c17, %c0_21] : memref<2x18x64xf32, #tpu.memory_space<vmem>>, vector<2x1x64xf32>
    tpu.vector_store %arg7[%c0_20, %c17, %c0_21], %30 {strides = array<i32>} : memref<2x18x64xf32, #tpu.memory_space<vmem>>, vector<2x1x64xf32>,
    %33 = vector.shape_cast %29 : vector<32x64xf32> to vector<2x16x64xf32>
    %c0_22 = arith.constant 0 : index
    %c1_23 = arith.constant 1 : index
    %c0_24 = arith.constant 0 : index
    %34 = vector.load %arg7[%c0_22, %c1_23, %c0_24] : memref<2x18x64xf32, #tpu.memory_space<vmem>>, vector<2x16x64xf32>
    tpu.vector_store %arg7[%c0_22, %c1_23, %c0_24], %33 {strides = array<i32>} : memref<2x18x64xf32, #tpu.memory_space<vmem>>, vector<2x16x64xf32>,
    %cst_25 = arith.constant 0.000000e+00 : f32
    %35 = vector.broadcast %cst_25 : f32 to vector<32x128xf32>
    %c0_26 = arith.constant 0 : index
    %c0_27 = arith.constant 0 : index
    %c0_28 = arith.constant 0 : index
    %36 = vector.load %arg7[%c0_26, %c0_27, %c0_28] : memref<2x18x64xf32, #tpu.memory_space<vmem>>, vector<2x16x64xf32>
    %37 = vector.shape_cast %36 : vector<2x16x64xf32> to vector<32x64xf32>
    %38 = arith.truncf %37 : vector<32x64xf32> to vector<32x64xbf16>
    %c0_29 = arith.constant 0 : index
    %c0_30 = arith.constant 0 : index
    %c0_31 = arith.constant 0 : index
    %39 = vector.load %arg4[%c0_29, %c0_30, %c0_31] : memref<3x64x128xbf16, #tpu.memory_space<vmem>>, vector<1x64x128xbf16>
    %40 = vector.shape_cast %39 : vector<1x64x128xbf16> to vector<64x128xbf16>
    %cst_32 = arith.constant dense<0.000000e+00> : vector<32x128xf32>
    %41 = tpu.matmul %38, %40, %cst_32 {dimension_numbers = #tpu.dot_dimension_numbers<[1], [0], [0], [1], [0, 0, 1, 1], [], []>} : vector<32x64xbf16>, vector<64x128xbf16>, vector<32x128xf32> -> vector<32x128xf32>
    %42 = arith.addf %35, %41 : vector<32x128xf32>
    %c0_33 = arith.constant 0 : index
    %c1_34 = arith.constant 1 : index
    %c0_35 = arith.constant 0 : index
    %43 = vector.load %arg7[%c0_33, %c1_34, %c0_35] : memref<2x18x64xf32, #tpu.memory_space<vmem>>, vector<2x16x64xf32>
    %44 = vector.shape_cast %43 : vector<2x16x64xf32> to vector<32x64xf32>
    %45 = arith.truncf %44 : vector<32x64xf32> to vector<32x64xbf16>
    %c1_36 = arith.constant 1 : index
    %c0_37 = arith.constant 0 : index
    %c0_38 = arith.constant 0 : index
    %46 = vector.load %arg4[%c1_36, %c0_37, %c0_38] : memref<3x64x128xbf16, #tpu.memory_space<vmem>>, vector<1x64x128xbf16>
    %47 = vector.shape_cast %46 : vector<1x64x128xbf16> to vector<64x128xbf16>
    %cst_39 = arith.constant dense<0.000000e+00> : vector<32x128xf32>
    %48 = tpu.matmul %45, %47, %cst_39 {dimension_numbers = #tpu.dot_dimension_numbers<[1], [0], [0], [1], [0, 0, 1, 1], [], []>} : vector<32x64xbf16>, vector<64x128xbf16>, vector<32x128xf32> -> vector<32x128xf32>
    %49 = arith.addf %42, %48 : vector<32x128xf32>
    %c0_40 = arith.constant 0 : index
    %c2_41 = arith.constant 2 : index
    %c0_42 = arith.constant 0 : index
    %50 = vector.load %arg7[%c0_40, %c2_41, %c0_42] : memref<2x18x64xf32, #tpu.memory_space<vmem>>, vector<2x16x64xf32>
    %51 = vector.shape_cast %50 : vector<2x16x64xf32> to vector<32x64xf32>
    %52 = arith.truncf %51 : vector<32x64xf32> to vector<32x64xbf16>
    %c2_43 = arith.constant 2 : index
    %c0_44 = arith.constant 0 : index
    %c0_45 = arith.constant 0 : index
    %53 = vector.load %arg4[%c2_43, %c0_44, %c0_45] : memref<3x64x128xbf16, #tpu.memory_space<vmem>>, vector<1x64x128xbf16>
    %54 = vector.shape_cast %53 : vector<1x64x128xbf16> to vector<64x128xbf16>
    %cst_46 = arith.constant dense<0.000000e+00> : vector<32x128xf32>
    %55 = tpu.matmul %52, %54, %cst_46 {dimension_numbers = #tpu.dot_dimension_numbers<[1], [0], [0], [1], [0, 0, 1, 1], [], []>} : vector<32x64xbf16>, vector<64x128xbf16>, vector<32x128xf32> -> vector<32x128xf32>
    %56 = arith.addf %49, %55 : vector<32x128xf32>
    %c0_47 = arith.constant 0 : index
    %c0_48 = arith.constant 0 : index
    %57 = vector.load %arg5[%c0_47, %c0_48] : memref<1x128xf32, #tpu.memory_space<vmem>>, vector<1x128xf32>
    %58 = vector.broadcast %57 : vector<1x128xf32> to vector<32x128xf32>
    %59 = arith.addf %56, %58 : vector<32x128xf32>
    %60 = vector.shape_cast %59 : vector<32x128xf32> to vector<2x16x128xf32>
    %c0_49 = arith.constant 0 : index
    %c0_50 = arith.constant 0 : index
    %c0_51 = arith.constant 0 : index
    %61 = vector.load %arg6[%c0_49, %c0_50, %c0_51] : memref<2x16x128xf32, #tpu.memory_space<vmem>>, vector<2x16x128xf32>
    tpu.vector_store %arg6[%c0_49, %c0_50, %c0_51], %60 {strides = array<i32>} : memref<2x16x128xf32, #tpu.memory_space<vmem>>, vector<2x16x128xf32>,
    return
  }
  func.func @transform_0(%arg0: i32) -> (i32, i32, i32) {
    %c0_i32 = arith.constant 0 : i32
    %c0_i32_0 = arith.constant 0 : i32
    %c0_i32_1 = arith.constant 0 : i32
    return %arg0, %c0_i32, %c0_i32_0 : i32, i32, i32
  }
  func.func @transform_1(%arg0: i32) -> (i32, i32, i32) {
    %c0_i32 = arith.constant 0 : i32
    %c0_i32_0 = arith.constant 0 : i32
    %c0_i32_1 = arith.constant 0 : i32
    %c0_i32_2 = arith.constant 0 : i32
    return %c0_i32, %c0_i32_0, %c0_i32_1 : i32, i32, i32
  }
  func.func @transform_2(%arg0: i32) -> (i32, i32) {
    %c0_i32 = arith.constant 0 : i32
    %c0_i32_0 = arith.constant 0 : i32
    %c0_i32_1 = arith.constant 0 : i32
    return %c0_i32, %c0_i32_0 : i32, i32
  }
  func.func @transform_3(%arg0: i32) -> (i32, i32, i32) {
    %c0_i32 = arith.constant 0 : i32
    %c0_i32_0 = arith.constant 0 : i32
    %c0_i32_1 = arith.constant 0 : i32
    %c0_i32_2 = arith.constant 0 : i32
    return %c0_i32, %c0_i32_0, %c0_i32_1 : i32, i32, i32
  }
  func.func @transform_4(%arg0: i32) -> (i32, i32) {
    %c0_i32 = arith.constant 0 : i32
    %c0_i32_0 = arith.constant 0 : i32
    %c0_i32_1 = arith.constant 0 : i32
    return %c0_i32, %c0_i32_0 : i32, i32
  }
  func.func @transform_5(%arg0: i32) -> (i32, i32, i32) {
    %c0_i32 = arith.constant 0 : i32
    %c0_i32_0 = arith.constant 0 : i32
    %c0_i32_1 = arith.constant 0 : i32
    return %arg0, %c0_i32, %c0_i32_0 : i32, i32, i32
  }
}

</mosaic_0001>

<bundles_post_ra>
// kernel: sepconv_apply.1
= control target key start
LH: loop header
LB: loop body
LE: loop exit
PB: predicated region body
PF: predicated region fallthrough
CT: control target
= control target key end

     0   :  { %vm49_vm0 = vcmask 1046528   ;;  %vm99_vm1 = vcmask 523264   ;;  %vm234_vm2 = vcmask 1045504   ;;  %vm358_vm3 = vcmask 516096   ;;  %s1037_s1 = inlined_call_operand.vmem [shape: bf16[3,64,64], index: 1, kind: input, shape index: {}]   ;;  %s1038_s0 = inlined_call_operand.vmem [shape: f32[2,18,64], index: 0, kind: input, shape index: {}]   ;;  %s1039_s3 = inlined_call_operand.vmem [shape: bf16[3,64,128], index: 3, kind: input, shape index: {}]   ;;  %s1040_s2 = inlined_call_operand.vmem [shape: f32[1,64], index: 2, kind: input, shape index: {}]   ;;  %s1041_s4 = inlined_call_operand.vmem [shape: f32[1,128], index: 4, kind: input, shape index: {}]   ;;  %s1042_s5 = inlined_call_operand.vmem [shape: f32[2,16,128], index: 5, kind: output, shape index: {}]  }
   0x1   :  { %v850_v0 = vld [vmem:[%s1037_s1 + $0x38] sm:$0xff]   ;;  %v852_v2 = vld [vmem:[%s1037_s1 + $0x30] sm:$0xff]   ;;  %v854_v4 = vld [vmem:[%s1037_s1 + $0x28] sm:$0xff]   ;;  %v874_v54 = vmov 0.0  }
   0x2   :  { %v851_v1 = vld [vmem:[%s1037_s1 + $0x18] sm:$0xff]   ;;  %777 = vmatprep.subr.bf16.mxu0 %v850_v0  ;;  %v853_v3 = vld [vmem:[%s1037_s1 + $0x10] sm:$0xff]   ;;  %v855_v5 = vld [vmem:[%s1037_s1 + $0x8] sm:$0xff]   ;;  %359 = vst.msk [vmem:[#allocation2] sm:$0x1] %vm358_vm3, %v874_v54 }
   0x3   :  { %789 = vmatprep.subr.bf16.mxu1 %v851_v1  ;;  %778 = vmatpush3.bf16.msra.mxu0 %v850_v0  ;;  %v856_v6 = vld [vmem:[%s1037_s1 + $0x20] sm:$0xff]   ;;  %v22_v8 = vld [vmem:[%s1038_s0 + $0x8] sm:$0xff]  ;;  %v23_v9 = vld [vmem:[%s1038_s0 + $0x10] sm:$0x3]  ;;  %360 = vst.msk [vmem:[#allocation2 + $0x18] sm:$0x1] %vm358_vm3, %v874_v54 }
   0x4   :  { %790 = vmatpush3.bf16.msra.mxu1 %v851_v1  ;;  %779 = vmatprep.subr.bf16.mxu0 %v852_v2  ;;  %v21_v7 = vld [vmem:[%s1038_s0] sm:$0xff]  ;;  %v28_v12 = vmax.f32 %v22_v8, 0.0  ;;  %v29_v13 = vmax.f32 %v23_v9, 0.0  ;;  %v24_v14 = vld [vmem:[%s1038_s0 + $0x18] sm:$0xff]  ;;  %v26_v16 = vld [vmem:[%s1038_s0 + $0x28] sm:$0x3] }
   0x5   :  { %791 = vmatprep.subr.bf16.mxu1 %v853_v3  ;;  %v857_v10 = vld [vmem:[%s1037_s1] sm:$0xff]   ;;  %v27_v11 = vmax.f32 %v21_v7, 0.0  ;;  %v30_v17 = vmax.f32 %v24_v14, 0.0  ;;  %v32_v24 = vmax.f32 %v26_v16, 0.0  ;;  %v858_v27 = vld [vmem:[%s1037_s1 + $0x58] sm:$0xff]   ;;  %v859_v38 = vld [vmem:[%s1037_s1 + $0x50] sm:$0xff]  }
   0x6   :  { %v25_v15 = vld [vmem:[%s1038_s0 + $0x20] sm:$0xff]  ;;  %v51_v20 = vrot.slane %v28_v12, 1  ;;  %v53_v21 = vrot.slane %v29_v13, 1  ;;  %v238_v22 = vrot.slane %v29_v13, 2  ;;  %v236_v35 = vrot.slane %v28_v12, 2  ;;  %v860_v42 = vld [vmem:[%s1037_s1 + $0x48] sm:$0xff]  }
   0x7   :  { %780 = vmatpush3.bf16.msra.mxu0 %v852_v2  ;;  %v31_v18 = vmax.f32 %v25_v15, 0.0  ;;  %v50_v19 = vrot.slane %v27_v11, 1  ;;  %v33_v23 = vpack.c.bf16 %v28_v12, %v27_v11  ;;  %v55_v25 = vrot.slane %v30_v17, 1  ;;  %v861_v46 = vld [vmem:[%s1037_s1 + $0x40] sm:$0xff]   ;;  %v862_v50 = vld [vmem:[%s1039_s3 + $0x38] sm:$0xff]   ;;  %v864_v52 = vld [vmem:[%s1039_s3 + $0x30] sm:$0xff]  }
   0x8   :  { %792 = vmatpush3.bf16.msra.mxu1 %v853_v3  ;;  %781 = vmatprep.subr.bf16.mxu0 %v854_v4  ;;  %v54_v29 = vsel %vm49_vm0, %v51_v20, %v53_v21  ;;  %v58_v32 = vrot.slane %v32_v24, 1  ;;  %v235_v34 = vrot.slane %v27_v11, 2  ;;  %v239_v40 = vsel %vm234_vm2, %v236_v35, %v238_v22  ;;  %v863_v51 = vld [vmem:[%s1039_s3 + $0x18] sm:$0xff]   ;;  %v865_v53 = vld [vmem:[%s1039_s3 + $0x10] sm:$0xff]   ;;  %361 = vst.msk [vmem:[#allocation2 + $0x11] sm:$0x1] %vm358_vm3, %v874_v54 }
   0x9   :  { %793 = vmatprep.subr.bf16.mxu1 %v855_v5  ;;  %v56_v26 = vrot.slane %v31_v18, 1  ;;  %v52_v28 = vsel %vm49_vm0, %v50_v19, %v51_v20  ;;  %797 = vmatprep.mubr.msk.bf16.mxu1 %vm99_vm1, %v33_v23  ;;  %v34_v33 = vpack.c.bf16 %v31_v18, %v30_v17  ;;  %v243_v43 = vrot.slane %v32_v24, 2  ;;  %362 = vst.msk [vmem:[#allocation2 + $0x29] sm:$0x1] %vm358_vm3, %v874_v54  ;;  %v866_v55 = vld [vmem:[%s1039_s3 + $0x28] sm:$0xff]   ;;  %v868_v57 = vld [vmem:[%s1039_s3 + $0x20] sm:$0xff]  }
   0xa   :  { %v64_v30 = vpack.c.bf16 %v54_v29, %v52_v28  ;;  %v237_v39 = vsel %vm234_vm2, %v235_v34, %v236_v35  ;;  %v240_v44 = vrot.slane %v30_v17, 2  ;;  %v241_v45 = vrot.slane %v31_v18, 2  ;;  %v867_v56 = vld [vmem:[%s1039_s3 + $0x8] sm:$0xff]   ;;  %v869_v58 = vld [vmem:[%s1039_s3] sm:$0xff]   ;;  %v870_v59 = vld [vmem:[%s1039_s3 + $0x58] sm:$0xff]  }
   0xb   :  { %782 = vmatpush3.bf16.msra.mxu0 %v854_v4  ;;  %v57_v31 = vsel %vm49_vm0, %v55_v25, %v56_v26  ;;  %v59_v36 = vsel %vm49_vm0, %v56_v26, %v58_v32  ;;  %v249_v41 = vpack.c.bf16 %v239_v40, %v237_v39  ;;  %v871_v39 = vld [vmem:[%s1039_s3 + $0x50] sm:$0xff]  }
   0xc   :  { %794 = vmatpush3.bf16.msra.mxu1 %v855_v5  ;;  %783 = vmatprep.subr.bf16.mxu0 %v856_v6  ;;  %v65_v37 = vpack.c.bf16 %v59_v36, %v57_v31  ;;  %v242_v47 = vsel %vm234_vm2, %v240_v44, %v241_v45  ;;  %v244_v48 = vsel %vm234_vm2, %v241_v45, %v243_v43  ;;  %v705_v5 = vld [vmem:[%s1040_s2] ss:$0 sm:$0xff] }
   0xd   :  { %795 = vmatprep.subr.bf16.mxu1 %v857_v10  ;;  %785 = vmatprep.mubr.msk.bf16.mxu0 %vm99_vm1, %v64_v30  ;;  %v250_v49 = vpack.c.bf16 %v244_v48, %v242_v47 }
   0xf   :  { %784 = vmatpush3.bf16.msra.mxu0 %v856_v6 }
  0x10   :  { %796 = vmatpush3.bf16.msra.mxu1 %v857_v10  ;;  %801 = vmatprep.subr.bf16.mxu0 %v858_v27 }
  0x11   :  { %813 = vmatprep.subr.bf16.mxu1 %v862_v50 }
  0x12   :  { %786 = vmatmul.mubr.msk.bf16.vlgmr.msra.gmra.mxu0 %vm99_vm1, %v65_v37 }
  0x13   :  { %798 = vmatmul.mubr.msk.bf16.vlgmr.msra.gmra.mxu1 %vm99_vm1, %v34_v33  ;;  %802 = vmatpush3.bf16.msra.mxu0 %v858_v27 }
  0x14   :  { %809 = vmatprep.mubr.msk.bf16.mxu0 %vm99_vm1, %v249_v41  ;;  %803 = vmatprep.subr.bf16.mxu0 %v859_v38  ;;  %v872_v41 = vld [vmem:[%s1039_s3 + $0x48] sm:$0xff]  }
  0x15   :  { %814 = vmatpush3.bf16.msra.mxu1 %v862_v50 }
  0x16   :  { %815 = vmatprep.subr.bf16.mxu1 %v864_v52 }
  0x17   :  { %804 = vmatpush3.bf16.msra.mxu0 %v859_v38 }
  0x18   :  { %805 = vmatprep.subr.bf16.mxu0 %v860_v42 }
  0x19   :  { %816 = vmatpush3.bf16.msra.mxu1 %v864_v52 }
  0x1a   :  { %817 = vmatprep.subr.bf16.mxu1 %v866_v55 }
  0x1b   :  { %806 = vmatpush3.bf16.msra.mxu0 %v860_v42  ;;  %v873_v42 = vld [vmem:[%s1039_s3 + $0x40] sm:$0xff]  }
  0x1c   :  { %807 = vmatprep.subr.bf16.mxu0 %v861_v46 }
  0x1d   :  { %818 = vmatpush3.bf16.msra.mxu1 %v866_v55  ;;  %v740_v55 = vld [vmem:[%s1041_s4] ss:$0 sm:$0xff] }
  0x1e   :  { %819 = vmatprep.subr.bf16.mxu1 %v868_v57 }
  0x1f   :  { %808 = vmatpush3.bf16.msra.mxu0 %v861_v46 }
  0x20   :  { %825 = vmatprep.subr.bf16.mxu0 %v863_v51 }
  0x21   :  { %820 = vmatpush3.bf16.msra.mxu1 %v868_v57 }
  0x22   :  { %810 = vmatmul.mubr.msk.bf16.vlgmr.msra.gmra.mxu0 %vm99_vm1, %v250_v49  ;;  %837 = vmatprep.subr.bf16.mxu1 %v870_v59 }
  0x23   :  { %826 = vmatpush3.bf16.msra.mxu0 %v863_v51 }
  0x24   :  { %827 = vmatprep.subr.bf16.mxu0 %v865_v53 }
  0x27   :  { %828 = vmatpush3.bf16.msra.mxu0 %v865_v53 }
  0x28   :  { %829 = vmatprep.subr.bf16.mxu0 %v867_v56 }
  0x2b   :  { %830 = vmatpush3.bf16.msra.mxu0 %v867_v56 }
  0x2c   :  { %831 = vmatprep.subr.bf16.mxu0 %v869_v58 }
  0x2f   :  { %832 = vmatpush3.bf16.msra.mxu0 %v869_v58 }
  0xd2   :  { %v787_v60 = vpop.f32.mrf.mxu0 }
  0xd3   :  { %v799_v61 = vpop.f32.mrf.mxu1 }
  0xd4   :  { %v140_v62 = vpop.f32.mrf.mxu0  ;;  %v228_v3 = vadd.f32 %v799_v61, %v787_v60 }
  0xd5   :  { %v219_v63 = vpop.f32.mrf.mxu1 }
  0xd6   :  { %v788_v0 = vpop.f32.mrf.mxu0  ;;  %v220_v6 = vadd.f32 %v219_v63, %v140_v62 }
  0xd7   :  { %v800_v1 = vpop.f32.mrf.mxu1 }
  0xd8   :  { %v143_v2 = vpop.f32.mrf.mxu0  ;;  %v231_v10 = vadd.f32 %v800_v1, %v788_v0 }
  0xd9   :  { %v222_v8 = vpop.f32.mrf.mxu1 }
  0xda   :  { %v223_v14 = vadd.f32 %v222_v8, %v143_v2 }
  0xe2   :  { %v811_v4 = vpop.f32.mrf.mxu0 }
  0xe3   :  { %v341_v7 = vadd.f32 %v811_v4, %v228_v3 }
  0xe4   :  { %v324_v9 = vpop.f32.mrf.mxu0 }
  0xe5   :  { %v352_v11 = vadd.f32 %v705_v5, %v341_v7  ;;  %v339_v12 = vadd.f32 %v324_v9, %v220_v6 }
  0xe6   :  { %v812_v13 = vpop.f32.mrf.mxu0 }
  0xe7   :  { %v356_v15 = vmax.f32 %v352_v11, 0.0  ;;  %v350_v16 = vadd.f32 %v705_v5, %v339_v12  ;;  %v342_v17 = vadd.f32 %v812_v13, %v231_v10 }
  0xe8   :  { %v327_v18 = vpop.f32.mrf.mxu0 }
  0xe9   :  { %365 = vst.msk [vmem:[#allocation2 + $0x19] sm:$0xff] %vm99_vm1, %v356_v15  ;;  %v354_v19 = vmax.f32 %v350_v16, 0.0  ;;  %v353_v20 = vadd.f32 %v705_v5, %v342_v17  ;;  %v340_v21 = vadd.f32 %v327_v18, %v223_v14 }
  0xeb   :  { %363 = vst.msk [vmem:[#allocation2 + $0x1] sm:$0xff] %vm99_vm1, %v354_v19  ;;  %v357_v22 = vmax.f32 %v353_v20, 0.0  ;;  %v351_v23 = vadd.f32 %v705_v5, %v340_v21 }
  0xed   :  { %366 = vst.msk [vmem:[#allocation2 + $0x21] sm:$0xff] %vm99_vm1, %v357_v22  ;;  %v355_v24 = vmax.f32 %v351_v23, 0.0 }
  0xef   :  { %364 = vst.msk [vmem:[#allocation2 + $0x9] sm:$0xff] %vm99_vm1, %v355_v24 }
  0xf0   :  { %v383_v34 = vld [vmem:[#allocation2 + $0x19] sm:$0xff] }
  0xf1   :  { %v369_v35 = vld [vmem:[#allocation2 + $0x18] sm:$0xff] }
  0xf2   :  { %v381_v25 = vld [vmem:[#allocation2 + $0x1] sm:$0xff] }
  0xf3   :  { %v367_v26 = vld [vmem:[#allocation2] sm:$0xff] }
  0xf4   :  { %v384_v27 = vld [vmem:[#allocation2 + $0x21] sm:$0xff] }
  0xf5   :  { %v370_v28 = vld [vmem:[#allocation2 + $0x20] sm:$0xff]  ;;  %v386_v37 = vpack.c.bf16 %v384_v27, %v383_v34 }
  0xf6   :  { %v382_v29 = vld [vmem:[#allocation2 + $0x9] sm:$0xff]  ;;  %v372_v38 = vpack.c.bf16 %v370_v28, %v369_v35  ;;  %v556_v43 = vld [vmem:[#allocation2 + $0x1a] sm:$0xff] }
  0xf7   :  { %v368_v30 = vld [vmem:[#allocation2 + $0x8] sm:$0xff]  ;;  %v385_v32 = vpack.c.bf16 %v382_v29, %v381_v25 }
  0xf8   :  { %v554_v31 = vld [vmem:[#allocation2 + $0x2] sm:$0xff]  ;;  %v371_v33 = vpack.c.bf16 %v368_v30, %v367_v26  ;;  %v555_v36 = vld [vmem:[#allocation2 + $0xa] sm:$0xff] }
  0xf9   :  { %821 = vmatprep.mubr.msk.bf16.mxu1 %vm99_vm1, %v385_v32  ;;  %v558_v40 = vpack.c.bf16 %v555_v36, %v554_v31  ;;  %v557_v44 = vld [vmem:[#allocation2 + $0x22] sm:$0xff] }
  0xfa   :  { %833 = vmatprep.mubr.msk.bf16.mxu0 %vm99_vm1, %v371_v33  ;;  %822 = vmatmul.mubr.msk.bf16.vlgmr.msra.gmra.mxu1 %vm99_vm1, %v386_v37  ;;  %v559_v45 = vpack.c.bf16 %v557_v44, %v556_v43 }
  0xfb   :  { %834 = vmatmul.mubr.msk.bf16.vlgmr.msra.gmra.mxu0 %vm99_vm1, %v372_v38  ;;  %838 = vmatpush3.bf16.msra.mxu1 %v870_v59 }
  0xfc   :  { %845 = vmatprep.mubr.msk.bf16.mxu1 %vm99_vm1, %v558_v40  ;;  %839 = vmatprep.subr.bf16.mxu1 %v871_v39 }
  0xff   :  { %840 = vmatpush3.bf16.msra.mxu1 %v871_v39 }
 0x100   :  { %841 = vmatprep.subr.bf16.mxu1 %v872_v41 }
 0x103   :  { %842 = vmatpush3.bf16.msra.mxu1 %v872_v41 }
 0x104   :  { %843 = vmatprep.subr.bf16.mxu1 %v873_v42 }
 0x107   :  { %844 = vmatpush3.bf16.msra.mxu1 %v873_v42 }
 0x10a   :  { %846 = vmatmul.mubr.msk.bf16.vlgmr.msra.gmra.mxu1 %vm99_vm1, %v559_v45 }
 0x1ba   :  { %v823_v46 = vpop.f32.mrf.mxu1 }
 0x1bb   :  { %v835_v47 = vpop.f32.mrf.mxu0 }
 0x1bc   :  { %v460_v48 = vpop.f32.mrf.mxu1  ;;  %v548_v53 = vadd.f32 %v835_v47, %v823_v46 }
 0x1bd   :  { %v539_v49 = vpop.f32.mrf.mxu0 }
 0x1be   :  { %v824_v50 = vpop.f32.mrf.mxu1  ;;  %v540_v56 = vadd.f32 %v539_v49, %v460_v48 }
 0x1bf   :  { %v836_v51 = vpop.f32.mrf.mxu0 }
 0x1c0   :  { %v463_v52 = vpop.f32.mrf.mxu1  ;;  %v551_v60 = vadd.f32 %v836_v51, %v824_v50 }
 0x1c1   :  { %v542_v58 = vpop.f32.mrf.mxu0 }
 0x1c2   :  { %v543_v0 = vadd.f32 %v542_v58, %v463_v52 }
 0x1ca   :  { %v847_v54 = vpop.f32.mrf.mxu1 }
 0x1cb   :  { %v650_v57 = vadd.f32 %v847_v54, %v548_v53 }
 0x1cc   :  { %v633_v59 = vpop.f32.mrf.mxu1 }
 0x1cd   :  { %v661_v61 = vadd.f32 %v740_v55, %v650_v57  ;;  %v648_v62 = vadd.f32 %v633_v59, %v540_v56 }
 0x1ce   :  { %v848_v63 = vpop.f32.mrf.mxu1 }
 0x1cf   :  { %665 = vst [vmem:[%s1042_s5 + $0x10] sm:$0xff] %v661_v61  ;;  %v659_v1 = vadd.f32 %v740_v55, %v648_v62  ;;  %v651_v2 = vadd.f32 %v848_v63, %v551_v60 }
 0x1d0   :  { %v636_v3 = vpop.f32.mrf.mxu1 }
 0x1d1   :  { %663 = vst [vmem:[%s1042_s5] sm:$0xff] %v659_v1  ;;  %v662_v4 = vadd.f32 %v740_v55, %v651_v2  ;;  %v649_v5 = vadd.f32 %v636_v3, %v543_v0 }
 0x1d3   :  { %666 = vst [vmem:[%s1042_s5 + $0x18] sm:$0xff] %v662_v4  ;;  %v660_v6 = vadd.f32 %v740_v55, %v649_v5 }
 0x1d5   :  { %664 = vst [vmem:[%s1042_s5 + $0x8] sm:$0xff] %v660_v6 }

</bundles_post_ra>
